<compile_context>
chip_gen: v6e
topology: v6e:2x2x1
jax: 0.10.0
libtpu: 0.0.40
codegen_flags: <defaults>
</compile_context>

<pallas_src>
import functools

import jax
import jax.numpy as jnp
from jax.experimental import pallas as pl
from jax.experimental.pallas import tpu as pltpu


def _round_up(x, m):
    return ((x + m - 1) // m) * m


def _mlp_fused_kernel(x_ref, *refs, num_layers, sigmoid_output):
    # refs = (w0, b0, w1, b1, ..., w_{L-1}, b_{L-1}, o_ref)
    o_ref = refs[-1]
    h = x_ref[...].astype(jnp.float32)
    for i in range(num_layers):
        w = refs[2 * i][...]
        b = refs[2 * i + 1][...]
        h = jnp.dot(h, w, preferred_element_type=jnp.float32) + b
        if i < num_layers - 1:
            h = jnp.maximum(h, 0.0)          # ReLU on the VPU
    if sigmoid_output:
        h = jax.nn.sigmoid(h)                # EUP exp + reciprocal
    o_ref[...] = h.astype(o_ref.dtype)


def mlp_forward(x2, padded_params, out_dim, sigmoid_output, tm=None):
    """Fused y = MLP(x2) for 2-D x2 (M, K). padded_params have lane-padded N dims."""
    M, K = x2.shape
    num_layers = len(padded_params)
    n_out_pad = padded_params[-1][0].shape[1]

    # Large M tile (multiple of 8, capped so VMEM stays comfortable on v7x's 64 MiB).
    if tm is None:
        tm = min(512, _round_up(M, 8))
    tm = max(8, _round_up(tm, 8))
    Mp = _round_up(M, tm)
    if Mp != M:                               # pad M once, slice once at the end
        x2 = jnp.pad(x2, ((0, Mp - M), (0, 0)))
    grid = (Mp // tm,)

    in_specs = [pl.BlockSpec((tm, K), lambda i: (i, 0))]   # activation tile
    flat_params = []
    for (w, b) in padded_params:
        kw, nw = w.shape
        in_specs.append(pl.BlockSpec((kw, nw), lambda i: (0, 0)))   # resident weight
        in_specs.append(pl.BlockSpec((1, nw), lambda i: (0, 0)))    # resident bias
        flat_params += [w, b]

    # Explicit VMEM budget: double-buffered x/out tiles + resident params +
    # per-layer intermediate, with margin; capped for v7x's smaller VMEM.
    f32b = 4
    param_bytes = sum(w.size + b.size for (w, b) in padded_params) * f32b
    max_n = max(w.shape[1] for (w, _) in padded_params)
    est = (2 * tm * K + 2 * tm * n_out_pad + num_layers * tm * max_n) * f32b \
        + 2 * param_bytes
    vmem_limit = int(min(max(4 * est, 32 << 20), 64 << 20))

    out = pl.pallas_call(
        functools.partial(_mlp_fused_kernel,
                          num_layers=num_layers,
                          sigmoid_output=sigmoid_output),
        out_shape=jax.ShapeDtypeStruct((Mp, n_out_pad), x2.dtype),
        grid_spec=pltpu.PrefetchScalarGridSpec(
            num_scalar_prefetch=0,
            grid=grid,
            in_specs=in_specs,
            out_specs=pl.BlockSpec((tm, n_out_pad), lambda i: (i, 0)),
        ),
        compiler_params=pltpu.CompilerParams(
            dimension_semantics=("parallel",),    # M tiles split across TCs on v7x
            vmem_limit_bytes=vmem_limit,
        ),
    )(x2, *flat_params)
    return out[:M, :out_dim]


class MLPPallas:
    """Pallas equivalent of the PyTorch MLP module (single fused kernel)."""

    def __init__(self, key, input_dim, hidden_dim, output_dim, num_layers,
                 sigmoid_output=False):
        self.num_layers = num_layers
        self.sigmoid_output = sigmoid_output
        self.output_dim = output_dim
        h = [hidden_dim] * (num_layers - 1)
        dims = list(zip([input_dim] + h, h + [output_dim]))

        # True (unpadded) params, same init scale as torch.nn.Linear default.
        self.params = []
        for i, (n_in, n_out) in enumerate(dims):
            kw, kb = jax.random.split(jax.random.fold_in(key, i))
            bound = 1.0 / (n_in ** 0.5)
            w = jax.random.uniform(kw, (n_in, n_out), jnp.float32, -bound, bound)
            b = jax.random.uniform(kb, (1, n_out), jnp.float32, -bound, bound)
            self.params.append((w, b))

        # Lane-padded params: every output (N) dim rounded up to a multiple of 128
        # (lane-dense matmuls + lane-dense final store). The padded K of layer i>0
        # matches layer i-1's padded N; zero rows/cols/biases contribute exactly 0.
        self.padded_params = []
        prev_n_pad = input_dim          # layer-0 K stays at the true input dim
        for (w, b) in self.params:
            k, n = w.shape
            k_pad = prev_n_pad
            n_pad = _round_up(n, 128)
            wp = jnp.zeros((k_pad, n_pad), w.dtype).at[:k, :n].set(w)
            bp = jnp.zeros((1, n_pad), b.dtype).at[:, :n].set(b)
            self.padded_params.append((wp, bp))
            prev_n_pad = n_pad

    def __call__(self, x, tm=None):
        lead = x.shape[:-1]
        x2 = x.reshape(-1, x.shape[-1])
        out = mlp_forward(x2, self.padded_params, self.output_dim,
                          self.sigmoid_output, tm=tm)
        return out.reshape(*lead, self.output_dim)


def _reference(mlp, x):
    """Pure-JAX reference reproducing the PyTorch forward exactly (unpadded params)."""
    lead = x.shape[:-1]
    x2 = x.reshape(-1, x.shape[-1])
    for i, (w, b) in enumerate(mlp.params):
        x2 = jnp.dot(x2, w, preferred_element_type=jnp.float32) + b
        if i < mlp.num_layers - 1:
            x2 = jnp.maximum(x2, 0.0)
    if mlp.sigmoid_output:
        x2 = jax.nn.sigmoid(x2)
    return x2.reshape(*lead, x2.shape[-1])


if __name__ == "__main__":
    key = jax.random.PRNGKey(0)
    k_x, k_p, k_x2 = jax.random.split(key, 3)

    # Small shapes consistent with the module: tokens (B=2, T=8) with feature dim 32.
    input_dim, hidden_dim, output_dim, num_layers = 32, 64, 16, 3
    x = jax.random.normal(k_x, (2, 8, input_dim), jnp.float32)

    mlp = MLPPallas(k_p, input_dim, hidden_dim, output_dim, num_layers,
                    sigmoid_output=False)
    out = jax.block_until_ready(mlp(x))
    ref = _reference(mlp, x)
    assert out.shape == (2, 8, output_dim), out.shape
    assert jnp.allclose(out, ref, atol=1e-5, rtol=1e-5), "mismatch vs reference"

    # Sigmoid-output variant.
    mlp_sig = MLPPallas(k_p, input_dim, hidden_dim, output_dim, num_layers,
                        sigmoid_output=True)
    out_s = jax.block_until_ready(mlp_sig(x))
    ref_s = _reference(mlp_sig, x)
    assert jnp.allclose(out_s, ref_s, atol=1e-5, rtol=1e-5), "sigmoid mismatch"

    # Larger M with an explicit smaller tile to exercise multi-step grid + M padding.
    x_big = jax.random.normal(k_x2, (4, 100, input_dim), jnp.float32)
    out_b = jax.block_until_ready(mlp(x_big, tm=128))
    ref_b = _reference(mlp, x_big)
    assert out_b.shape == (4, 100, output_dim), out_b.shape
    assert jnp.allclose(out_b, ref_b, atol=1e-5, rtol=1e-5), "big-M mismatch"

    print("KERNEL_OK")
</pallas_src>

<mosaic_0001>
module attributes {stable_mosaic.version = 11 : i64} {
  func.func @_mlp_fused_kernel(%arg0: i32, %arg1: memref<16x32xf32, #tpu.memory_space<vmem>>, %arg2: memref<32x128xf32, #tpu.memory_space<vmem>>, %arg3: memref<1x128xf32, #tpu.memory_space<vmem>>, %arg4: memref<128x128xf32, #tpu.memory_space<vmem>>, %arg5: memref<1x128xf32, #tpu.memory_space<vmem>>, %arg6: memref<128x128xf32, #tpu.memory_space<vmem>>, %arg7: memref<1x128xf32, #tpu.memory_space<vmem>>, %arg8: memref<16x128xf32, #tpu.memory_space<vmem>>) attributes {dimension_semantics = [#tpu.dimension_semantics<parallel>], iteration_bounds = array<i64: 1>, scalar_prefetch = 0 : i64, scratch_operands = 0 : i64, tpu.core_type = #tpu.core_type<tc>, window_params = [{transform_indices = @transform_0, window_bounds = array<i64: 16, 32>}, {pipeline_mode = #tpu.pipeline_mode<synchronous>, transform_indices = @transform_1, window_bounds = array<i64: 32, 128>}, {pipeline_mode = #tpu.pipeline_mode<synchronous>, transform_indices = @transform_2, window_bounds = array<i64: 1, 128>}, {pipeline_mode = #tpu.pipeline_mode<synchronous>, transform_indices = @transform_3, window_bounds = array<i64: 128, 128>}, {pipeline_mode = #tpu.pipeline_mode<synchronous>, transform_indices = @transform_4, window_bounds = array<i64: 1, 128>}, {pipeline_mode = #tpu.pipeline_mode<synchronous>, transform_indices = @transform_5, window_bounds = array<i64: 128, 128>}, {pipeline_mode = #tpu.pipeline_mode<synchronous>, transform_indices = @transform_6, window_bounds = array<i64: 1, 128>}, {transform_indices = @transform_7, window_bounds = array<i64: 16, 128>}]} {
    %c0 = arith.constant 0 : index
    %c0_0 = arith.constant 0 : index
    %0 = vector.load %arg1[%c0, %c0_0] : memref<16x32xf32, #tpu.memory_space<vmem>>, vector<16x32xf32>
    %c0_1 = arith.constant 0 : index
    %c0_2 = arith.constant 0 : index
    %1 = vector.load %arg2[%c0_1, %c0_2] : memref<32x128xf32, #tpu.memory_space<vmem>>, vector<32x128xf32>
    %c0_3 = arith.constant 0 : index
    %c0_4 = arith.constant 0 : index
    %2 = vector.load %arg3[%c0_3, %c0_4] : memref<1x128xf32, #tpu.memory_space<vmem>>, vector<1x128xf32>
    %cst = arith.constant dense<0.000000e+00> : vector<16x128xf32>
    %3 = tpu.matmul %0, %1, %cst {dimension_numbers = #tpu.dot_dimension_numbers<[1], [0], [0], [1], [0, 0, 1, 1], [], []>} : vector<16x32xf32>, vector<32x128xf32>, vector<16x128xf32> -> vector<16x128xf32>
    %4 = vector.broadcast %2 : vector<1x128xf32> to vector<16x128xf32>
    %5 = arith.addf %3, %4 : vector<16x128xf32>
    %cst_5 = arith.constant 0.000000e+00 : f32
    %6 = vector.broadcast %cst_5 : f32 to vector<16x128xf32>
    %7 = arith.maximumf %5, %6 : vector<16x128xf32>
    %c0_6 = arith.constant 0 : index
    %c0_7 = arith.constant 0 : index
    %8 = vector.load %arg4[%c0_6, %c0_7] : memref<128x128xf32, #tpu.memory_space<vmem>>, vector<128x128xf32>
    %c0_8 = arith.constant 0 : index
    %c0_9 = arith.constant 0 : index
    %9 = vector.load %arg5[%c0_8, %c0_9] : memref<1x128xf32, #tpu.memory_space<vmem>>, vector<1x128xf32>
    %cst_10 = arith.constant dense<0.000000e+00> : vector<16x128xf32>
    %10 = tpu.matmul %7, %8, %cst_10 {dimension_numbers = #tpu.dot_dimension_numbers<[1], [0], [0], [1], [0, 0, 1, 1], [], []>} : vector<16x128xf32>, vector<128x128xf32>, vector<16x128xf32> -> vector<16x128xf32>
    %11 = vector.broadcast %9 : vector<1x128xf32> to vector<16x128xf32>
    %12 = arith.addf %10, %11 : vector<16x128xf32>
    %cst_11 = arith.constant 0.000000e+00 : f32
    %13 = vector.broadcast %cst_11 : f32 to vector<16x128xf32>
    %14 = arith.maximumf %12, %13 : vector<16x128xf32>
    %c0_12 = arith.constant 0 : index
    %c0_13 = arith.constant 0 : index
    %15 = vector.load %arg6[%c0_12, %c0_13] : memref<128x128xf32, #tpu.memory_space<vmem>>, vector<128x128xf32>
    %c0_14 = arith.constant 0 : index
    %c0_15 = arith.constant 0 : index
    %16 = vector.load %arg7[%c0_14, %c0_15] : memref<1x128xf32, #tpu.memory_space<vmem>>, vector<1x128xf32>
    %cst_16 = arith.constant dense<0.000000e+00> : vector<16x128xf32>
    %17 = tpu.matmul %14, %15, %cst_16 {dimension_numbers = #tpu.dot_dimension_numbers<[1], [0], [0], [1], [0, 0, 1, 1], [], []>} : vector<16x128xf32>, vector<128x128xf32>, vector<16x128xf32> -> vector<16x128xf32>
    %18 = vector.broadcast %16 : vector<1x128xf32> to vector<16x128xf32>
    %19 = arith.addf %17, %18 : vector<16x128xf32>
    %c0_17 = arith.constant 0 : index
    %c0_18 = arith.constant 0 : index
    %20 = vector.load %arg8[%c0_17, %c0_18] : memref<16x128xf32, #tpu.memory_space<vmem>>, vector<16x128xf32>
    tpu.vector_store %arg8[%c0_17, %c0_18], %19 {strides = array<i32>} : memref<16x128xf32, #tpu.memory_space<vmem>>, vector<16x128xf32>,
    return
  }
  func.func @transform_0(%arg0: i32) -> (i32, i32) {
    %c0_i32 = arith.constant 0 : i32
    %c0_i32_0 = arith.constant 0 : i32
    return %arg0, %c0_i32 : i32, i32
  }
  func.func @transform_1(%arg0: i32) -> (i32, i32) {
    %c0_i32 = arith.constant 0 : i32
    %c0_i32_0 = arith.constant 0 : i32
    %c0_i32_1 = arith.constant 0 : i32
    return %c0_i32, %c0_i32_0 : i32, i32
  }
  func.func @transform_2(%arg0: i32) -> (i32, i32) {
    %c0_i32 = arith.constant 0 : i32
    %c0_i32_0 = arith.constant 0 : i32
    %c0_i32_1 = arith.constant 0 : i32
    return %c0_i32, %c0_i32_0 : i32, i32
  }
  func.func @transform_3(%arg0: i32) -> (i32, i32) {
    %c0_i32 = arith.constant 0 : i32
    %c0_i32_0 = arith.constant 0 : i32
    %c0_i32_1 = arith.constant 0 : i32
    return %c0_i32, %c0_i32_0 : i32, i32
  }
  func.func @transform_4(%arg0: i32) -> (i32, i32) {
    %c0_i32 = arith.constant 0 : i32
    %c0_i32_0 = arith.constant 0 : i32
    %c0_i32_1 = arith.constant 0 : i32
    return %c0_i32, %c0_i32_0 : i32, i32
  }
  func.func @transform_5(%arg0: i32) -> (i32, i32) {
    %c0_i32 = arith.constant 0 : i32
    %c0_i32_0 = arith.constant 0 : i32
    %c0_i32_1 = arith.constant 0 : i32
    return %c0_i32, %c0_i32_0 : i32, i32
  }
  func.func @transform_6(%arg0: i32) -> (i32, i32) {
    %c0_i32 = arith.constant 0 : i32
    %c0_i32_0 = arith.constant 0 : i32
    %c0_i32_1 = arith.constant 0 : i32
    return %c0_i32, %c0_i32_0 : i32, i32
  }
  func.func @transform_7(%arg0: i32) -> (i32, i32) {
    %c0_i32 = arith.constant 0 : i32
    %c0_i32_0 = arith.constant 0 : i32
    return %arg0, %c0_i32 : i32, i32
  }
}

</mosaic_0001>

<bundles_post_ra>
// kernel: tpu_custom_call.1
= control target key start
LH: loop header
LB: loop body
LE: loop exit
PB: predicated region body
PF: predicated region fallthrough
CT: control target
= control target key end

     0   :  { %12 = vsyncpa [#allocation3], 0  ;;  %s729_s0 = inlined_call_operand.hbm [shape: f32[16,32], index: 0, kind: input, shape index: {}]   ;;  %s730_s1 = inlined_call_operand.hbm [shape: f32[32,128], index: 1, kind: input, shape index: {}]   ;;  %s731_s2 = inlined_call_operand.vmem [shape: f32[1,128], index: 2, kind: input, shape index: {}]   ;;  %s732_s3 = inlined_call_operand.hbm [shape: f32[128,128], index: 3, kind: input, shape index: {}]   ;;  %s733_s4 = inlined_call_operand.vmem [shape: f32[1,128], index: 4, kind: input, shape index: {}]   ;;  %s734_s5 = inlined_call_operand.hbm [shape: f32[128,128], index: 5, kind: input, shape index: {}]   ;;  %s735_s6 = inlined_call_operand.vmem [shape: f32[1,128], index: 6, kind: input, shape index: {}]   ;;  %s736_s7 = inlined_call_operand.hbm [shape: f32[16,128], index: 7, kind: output, shape index: {}]  }
   0x1   :  { %13 = vsyncpa [#allocation6], 0 }
   0x2   :  { %14 = vsyncpa [#allocation9], 0 }
   0x3   :  { %15 = vsyncpa [#allocation4], 0  ;;  %s641_s24 = smov [#allocation5]   ;;  %s642_s26 = smov [#allocation2]  }
   0x4   :  { %s33_s25 = sshll.u32 %s641_s24, 4  ;;  %s21_s27 = sshll.u32 %s642_s26, 4  ;;  %s34_s25 = int_to_ptr.vmem [resolvable:$true] %s33_s25  ;;  %s22_s27 = int_to_ptr.vmem [resolvable:$true] %s21_s27 }
   0x5   :  { %s541_s28 = scalar_lea.vmem %s34_s25, 512  ;;  %p546_p1 = scmp.lt.s32.totalorder %s34_s25, %s34_s25 }
   0x6   :  { %p542_p0 = scmp.ne.s32.totalorder %s34_s25, %s541_s28  ;;  %p547_p2 = scmp.lt.s32.totalorder %s541_s28, %s541_s28 }
   0x8   :  { %p548_p3 = por %p547_p2, %p546_p1 }
   0xa   :  { %p549_p4 = pnand %p548_p3, %p542_p0 }
   0xc   :  { %552 = shalt.err (!%p549_p4)
}
   0xd   :  { %s643_s29 = smov 128   ;;  %s644_s30 = smov 8  }
   0xe   :  { %39 = dma.hbm_to_vmem [thread:$0]  %s730_s1, 512, %s34_s25, [#allocation6], %s643_s29, %s643_s29, %s644_s30  }
   0xf   :  { %s561_s10 = scalar_lea.vmem %s22_s27, 256  ;;  %p566_p6 = scmp.lt.s32.totalorder %s22_s27, %s22_s27 }
  0x10   :  { %p562_p5 = scmp.ne.s32.totalorder %s22_s27, %s561_s10  ;;  %p567_p7 = scmp.lt.s32.totalorder %s561_s10, %s561_s10 }
  0x12   :  { %p568_p8 = por %p567_p7, %p566_p6 }
  0x14   :  { %p569_p9 = pnand %p568_p8, %p562_p5 }
  0x16   :  { %572 = shalt.err (!%p569_p9)
}
  0x17   :  { %27 = dma.hbm_to_vmem [thread:$0]  %s729_s0, 256, %s22_s27, [#allocation3], %s643_s29, %s643_s29, %s644_s30  }
  0x18   :  { %s645_s13 = smov [#allocation7]   ;;  %s646_s15 = smov [#allocation8]  }
  0x19   :  { %s47_s14 = sshll.u32 %s645_s13, 4  ;;  %s61_s16 = sshll.u32 %s646_s15, 4  ;;  %s48_s14 = int_to_ptr.vmem [resolvable:$true] %s47_s14  ;;  %s62_s16 = int_to_ptr.vmem [resolvable:$true] %s61_s16 }
  0x1a   :  { %s581_s1 = scalar_lea.vmem %s48_s14, 2048  ;;  %p586_p11 = scmp.lt.s32.totalorder %s48_s14, %s48_s14 }
  0x1b   :  { %p582_p10 = scmp.ne.s32.totalorder %s48_s14, %s581_s1  ;;  %p587_p12 = scmp.lt.s32.totalorder %s581_s1, %s581_s1 }
  0x1d   :  { %p588_p13 = por %p587_p12, %p586_p11 }
  0x1f   :  { %p589_p0 = pnand %p588_p13, %p582_p10 }
  0x21   :  { %592 = shalt.err (!%p589_p0)
}
  0x22   :  { %53 = dma.hbm_to_vmem [thread:$0]  %s732_s3, 2048, %s48_s14, [#allocation6], %s643_s29, %s643_s29, %s644_s30  }
  0x23   :  { %s601_s0 = scalar_lea.vmem %s62_s16, 2048  ;;  %p606_p2 = scmp.lt.s32.totalorder %s62_s16, %s62_s16 }
  0x24   :  { %p602_p1 = scmp.ne.s32.totalorder %s62_s16, %s601_s0  ;;  %p607_p3 = scmp.lt.s32.totalorder %s601_s0, %s601_s0 }
  0x26   :  { %p608_p4 = por %p607_p3, %p606_p2 }
  0x28   :  { %p609_p5 = pnand %p608_p4, %p602_p1 }
  0x2a   :  { %612 = shalt.err (!%p609_p5)
}
  0x2b   :  { %67 = dma.hbm_to_vmem [thread:$0]  %s734_s5, 2048, %s62_s16, [#allocation9], %s643_s29, %s643_s29, %s644_s30  }
  0x2c   :  { %633 = dma.done.wait [#allocation3], 256  }
  0x2d   :  { %634 = vsyncadd [#allocation3], 4294967040 }
  0x2e   :  { %635 = dma.done.wait [#allocation6], 2560  }
  0x2f   :  { %636 = vsyncadd [#allocation6], 4294964736 }
  0x30   :  { %637 = dma.done.wait [#allocation9], 2048  }
  0x31   :  { %638 = vsyncadd [#allocation9], 4294965248  ;;  %vm95_vm0 = vcmask 261120   ;;  %v87_v0 = vld [vmem:[#allocation5 + $0x18] sm:$0xff]  ;;  %v86_v1 = vld [vmem:[#allocation5 + $0x10] sm:$0xff]  ;;  %s647_s24 = smov [#allocation10]  }
  0x32   :  { %445 = vmatprep.subr.mxu0 %v87_v0  ;;  %v82_v2 = vld [vmem:[#allocation2] sm:$0xff]  ;;  %v85_v3 = vld [vmem:[#allocation5 + $0x8] sm:$0xff]  ;;  %v194_v4 = vld [vmem:[#allocation7 + $0x78] sm:$0xff]  ;;  %s384_s25 = sshll.u32 %s647_s24, 4  ;;  %s385_s25 = int_to_ptr.vmem [resolvable:$true] %s384_s25 }
  0x33   :  { %446 = vmatpush3.msra.mxu0 %v87_v0  ;;  %453 = vmatprep.mubr.msk.f32.mxu0 %vm95_vm0, %v82_v2  ;;  %v193_v5 = vld [vmem:[#allocation7 + $0x70] sm:$0xff]  ;;  %v84_v6 = vld [vmem:[#allocation5] sm:$0xff]  ;;  %v192_v7 = vld [vmem:[#allocation7 + $0x68] sm:$0xff]  ;;  %p618_p7 = scmp.lt.s32.totalorder %s385_s25, %s385_s25 }
  0x34   :  { %447 = vmatprep.subr.mxu0 %v86_v1  ;;  %456 = vmatprep.subr.mxu1 %v194_v4  ;;  %v83_v8 = vld [vmem:[#allocation2 + $0x8] sm:$0xff]  ;;  %v191_v9 = vld [vmem:[#allocation7 + $0x60] sm:$0xff]  ;;  %v189_v11 = vld [vmem:[#allocation7 + $0x50] sm:$0xff] }
  0x35   :  { %448 = vmatpush3.msra.mxu0 %v86_v1  ;;  %457 = vmatpush3.msra.mxu1 %v194_v4  ;;  %v190_v10 = vld [vmem:[#allocation7 + $0x58] sm:$0xff]  ;;  %v188_v12 = vld [vmem:[#allocation7 + $0x48] sm:$0xff]  ;;  %v187_v13 = vld [vmem:[#allocation7 + $0x40] sm:$0xff] }
  0x36   :  { %449 = vmatprep.subr.mxu0 %v85_v3  ;;  %458 = vmatprep.subr.mxu1 %v193_v5  ;;  %v186_v14 = vld [vmem:[#allocation7 + $0x38] sm:$0xff]  ;;  %v185_v15 = vld [vmem:[#allocation7 + $0x30] sm:$0xff]  ;;  %v184_v16 = vld [vmem:[#allocation7 + $0x28] sm:$0xff] }
  0x37   :  { %450 = vmatpush3.msra.mxu0 %v85_v3  ;;  %459 = vmatpush3.msra.mxu1 %v193_v5  ;;  %v183_v17 = vld [vmem:[#allocation7 + $0x20] sm:$0xff]  ;;  %v182_v18 = vld [vmem:[#allocation7 + $0x18] sm:$0xff]  ;;  %v181_v19 = vld [vmem:[#allocation7 + $0x10] sm:$0xff] }
  0x38   :  { %451 = vmatprep.subr.mxu0 %v84_v6  ;;  %460 = vmatprep.subr.mxu1 %v192_v7  ;;  %v180_v20 = vld [vmem:[#allocation7 + $0x8] sm:$0xff]  ;;  %v179_v21 = vld [vmem:[#allocation7] sm:$0xff]  ;;  %v294_v22 = vld [vmem:[#allocation8 + $0x78] sm:$0xff] }
  0x39   :  { %452 = vmatpush3.msra.mxu0 %v84_v6  ;;  %461 = vmatpush3.msra.mxu1 %v192_v7  ;;  %v293_v23 = vld [vmem:[#allocation8 + $0x70] sm:$0xff]  ;;  %v292_v24 = vld [vmem:[#allocation8 + $0x68] sm:$0xff]  ;;  %v291_v25 = vld [vmem:[#allocation8 + $0x60] sm:$0xff] }
  0x3a   :  { %454 = vmatmul.mubr.msk.f32.vlgmr.msra.gmra.mxu0 %vm95_vm0, %v83_v8  ;;  %462 = vmatprep.subr.mxu1 %v191_v9  ;;  %v290_v26 = vld [vmem:[#allocation8 + $0x58] sm:$0xff]  ;;  %v289_v27 = vld [vmem:[#allocation8 + $0x50] sm:$0xff]  ;;  %v288_v28 = vld [vmem:[#allocation8 + $0x48] sm:$0xff] }
  0x3b   :  { %463 = vmatpush3.msra.mxu1 %v191_v9  ;;  %491 = vmatprep.subr.mxu0 %v294_v22  ;;  %v287_v29 = vld [vmem:[#allocation8 + $0x40] sm:$0xff]  ;;  %v286_v30 = vld [vmem:[#allocation8 + $0x38] sm:$0xff]  ;;  %v285_v31 = vld [vmem:[#allocation8 + $0x30] sm:$0xff] }
  0x3c   :  { %464 = vmatprep.subr.mxu1 %v190_v10  ;;  %492 = vmatpush3.msra.mxu0 %v294_v22  ;;  %v284_v32 = vld [vmem:[#allocation8 + $0x28] sm:$0xff]  ;;  %v283_v33 = vld [vmem:[#allocation8 + $0x20] sm:$0xff]  ;;  %v398_v34 = vld [vmem:[%s731_s2] ss:$0 sm:$0xff] }
  0x3d   :  { %465 = vmatpush3.msra.mxu1 %v190_v10  ;;  %493 = vmatprep.subr.mxu0 %v293_v23  ;;  %v282_v41 = vld [vmem:[#allocation8 + $0x18] sm:$0xff]  ;;  %v281_v42 = vld [vmem:[#allocation8 + $0x10] sm:$0xff]  ;;  %v280_v43 = vld [vmem:[#allocation8 + $0x8] sm:$0xff] }
  0x3e   :  { %466 = vmatprep.subr.mxu1 %v189_v11  ;;  %494 = vmatpush3.msra.mxu0 %v293_v23  ;;  %v279_v44 = vld [vmem:[#allocation8] sm:$0xff]  ;;  %v401_v45 = vld [vmem:[%s733_s4] ss:$0 sm:$0xff]  ;;  %s613_s4 = scalar_lea.vmem %s385_s25, 256 }
  0x3f   :  { %467 = vmatpush3.msra.mxu1 %v189_v11  ;;  %495 = vmatprep.subr.mxu0 %v292_v24  ;;  %v402_v52 = vld [vmem:[%s735_s6] ss:$0 sm:$0xff]  ;;  %p614_p6 = scmp.ne.s32.totalorder %s385_s25, %s613_s4  ;;  %p619_p8 = scmp.lt.s32.totalorder %s613_s4, %s613_s4 }
  0x40   :  { %468 = vmatprep.subr.mxu1 %v188_v12  ;;  %496 = vmatpush3.msra.mxu0 %v292_v24 }
  0x41   :  { %469 = vmatpush3.msra.mxu1 %v188_v12  ;;  %497 = vmatprep.subr.mxu0 %v291_v25  ;;  %p620_p9 = por %p619_p8, %p618_p7 }
  0x42   :  { %470 = vmatprep.subr.mxu1 %v187_v13  ;;  %498 = vmatpush3.msra.mxu0 %v291_v25 }
  0x43   :  { %471 = vmatpush3.msra.mxu1 %v187_v13  ;;  %499 = vmatprep.subr.mxu0 %v290_v26  ;;  %p621_p10 = pnand %p620_p9, %p614_p6 }
  0x44   :  { %472 = vmatprep.subr.mxu1 %v186_v14  ;;  %500 = vmatpush3.msra.mxu0 %v290_v26 }
  0x45   :  { %473 = vmatpush3.msra.mxu1 %v186_v14  ;;  %501 = vmatprep.subr.mxu0 %v289_v27 }
  0x46   :  { %474 = vmatprep.subr.mxu1 %v185_v15  ;;  %502 = vmatpush3.msra.mxu0 %v289_v27 }
  0x47   :  { %475 = vmatpush3.msra.mxu1 %v185_v15  ;;  %503 = vmatprep.subr.mxu0 %v288_v28 }
  0x48   :  { %476 = vmatprep.subr.mxu1 %v184_v16  ;;  %504 = vmatpush3.msra.mxu0 %v288_v28 }
  0x49   :  { %477 = vmatpush3.msra.mxu1 %v184_v16  ;;  %505 = vmatprep.subr.mxu0 %v287_v29 }
  0x4a   :  { %478 = vmatprep.subr.mxu1 %v183_v17  ;;  %506 = vmatpush3.msra.mxu0 %v287_v29 }
  0x4b   :  { %479 = vmatpush3.msra.mxu1 %v183_v17  ;;  %507 = vmatprep.subr.mxu0 %v286_v30 }
  0x4c   :  { %480 = vmatprep.subr.mxu1 %v182_v18  ;;  %508 = vmatpush3.msra.mxu0 %v286_v30 }
  0x4d   :  { %481 = vmatpush3.msra.mxu1 %v182_v18  ;;  %509 = vmatprep.subr.mxu0 %v285_v31 }
  0x4e   :  { %482 = vmatprep.subr.mxu1 %v181_v19  ;;  %510 = vmatpush3.msra.mxu0 %v285_v31 }
  0x4f   :  { %483 = vmatpush3.msra.mxu1 %v181_v19  ;;  %511 = vmatprep.subr.mxu0 %v284_v32 }
  0x50   :  { %484 = vmatprep.subr.mxu1 %v180_v20  ;;  %512 = vmatpush3.msra.mxu0 %v284_v32 }
  0x51   :  { %485 = vmatpush3.msra.mxu1 %v180_v20  ;;  %513 = vmatprep.subr.mxu0 %v283_v33 }
  0x52   :  { %486 = vmatprep.subr.mxu1 %v179_v21  ;;  %514 = vmatpush3.msra.mxu0 %v283_v33 }
  0x53   :  { %487 = vmatpush3.msra.mxu1 %v179_v21  ;;  %515 = vmatprep.subr.mxu0 %v282_v41 }
  0x54   :  { %516 = vmatpush3.msra.mxu0 %v282_v41 }
  0x55   :  { %517 = vmatprep.subr.mxu0 %v281_v42 }
  0x56   :  { %518 = vmatpush3.msra.mxu0 %v281_v42 }
  0x57   :  { %519 = vmatprep.subr.mxu0 %v280_v43 }
  0x58   :  { %520 = vmatpush3.msra.mxu0 %v280_v43 }
  0x59   :  { %521 = vmatprep.subr.mxu0 %v279_v44 }
  0x5a   :  { %522 = vmatpush3.msra.mxu0 %v279_v44 }
  0xfa   :  { %v455_v35 = vpop.f32.mrf.mxu0 }
  0xfb   :  { %v174_v36 = vadd.f32 %v455_v35, %v398_v34 }
  0xfc   :  { %v168_v37 = vpop.f32.mrf.mxu0 }
  0xfd   :  { %v169_v38 = vadd.f32 %v398_v34, %v168_v37  ;;  %v178_v40 = vmax.f32 %v174_v36, 0.0 }
  0xff   :  { %v177_v39 = vmax.f32 %v169_v38, 0.0 }
 0x101   :  { %488 = vmatprep.mubr.f32.mxu1 %v177_v39 }
 0x102   :  { %489 = vmatmul.mubr.f32.vlgmr.msra.gmra.mxu1 %v178_v40 }
 0x1c2   :  { %v490_v46 = vpop.f32.mrf.mxu1 }
 0x1c3   :  { %v274_v47 = vadd.f32 %v490_v46, %v401_v45 }
 0x1c4   :  { %v268_v48 = vpop.f32.mrf.mxu1 }
 0x1c5   :  { %v269_v49 = vadd.f32 %v401_v45, %v268_v48  ;;  %v278_v51 = vmax.f32 %v274_v47, 0.0 }
 0x1c7   :  { %v277_v50 = vmax.f32 %v269_v49, 0.0 }
 0x1c9   :  { %523 = vmatprep.mubr.f32.mxu0 %v277_v50 }
 0x1ca   :  { %524 = vmatmul.mubr.f32.vlgmr.msra.gmra.mxu0 %v278_v51 }
 0x28a   :  { %v525_v53 = vpop.f32.mrf.mxu0 }
 0x28b   :  { %v374_v54 = vadd.f32 %v525_v53, %v402_v52 }
 0x28c   :  { %v368_v55 = vpop.f32.mrf.mxu0 }
 0x28d   :  { %378 = vst [vmem:[#allocation10 + $0x8] sm:$0xff] %v374_v54  ;;  %v369_v56 = vadd.f32 %v402_v52, %v368_v55 }
 0x28f   :  { %377 = vst [vmem:[#allocation10] sm:$0xff] %v369_v56 }
 0x290   :  { %624 = shalt.err (!%p621_p10)
}
 0x291   :  { %390 = dma.vmem_to_hbm [thread:$0]  %s385_s25, 256, %s736_s7, [#allocation4], %s643_s29, %s643_s29, %s644_s30  }
 0x292   :  { %639 = dma.done.wait [#allocation4], 256  }
 0x293   :  { %640 = vsyncadd [#allocation4], 4294967040 }
 0x294   :  { %394 = vsyncpa [#allocation3], 1 }
 0x295   :  { %395 = vsyncpa [#allocation6], 1 }
 0x296   :  { %396 = vsyncpa [#allocation9], 1 }
 0x297   :  { %397 = vsyncpa [#allocation4], 1 }

</bundles_post_ra>
